<compile_context>
chip_gen: v5e
topology: v5e:2x2
jax: 0.10.0
libtpu: 0.0.40
codegen_flags: <defaults>
</compile_context>

<pallas_src>
import math
from functools import partial

import jax
import jax.numpy as jnp
from jax import lax
from jax.experimental import pallas as pl
from jax.experimental.pallas import tpu as pltpu

EPS = 1e-12                  # reference LayerNorm eps
MXU_DTYPE = jnp.bfloat16     # matmul operand dtype (f32 accumulation)
VMEM_LIMIT = 32 * 1024 * 1024


def _cparams(n_parallel):
    return pltpu.CompilerParams(
        dimension_semantics=("parallel",) * n_parallel,
        vmem_limit_bytes=VMEM_LIMIT)


# ----------------------------- in-kernel helpers ---------------------------- #

def _layernorm_res(x, sub, gamma, beta):
    """LayerNorm(x + sub) over the last axis; biased variance, f32 math."""
    s = x + sub
    mean = jnp.mean(s, axis=-1, keepdims=True)
    var = jnp.mean((s - mean) ** 2, axis=-1, keepdims=True)
    return gamma * ((s - mean) * lax.rsqrt(var + EPS)) + beta


def _sdpa_heads(q, k, v, attn_ref, *, num_heads, causal):
    """Scaled-dot-product attention over all heads.

    q: [Sq, D] bf16, ALREADY pre-scaled by 1/sqrt(head_dim).
    k, v: [Sk, D] bf16.
    Writes per-head softmax weights (f32) into attn_ref[0] ([H, Sq, Sk]) and
    returns the concatenated per-head context [Sq, D] (f32).  All casts / mask
    construction are hoisted out of the head loop.
    """
    Sq, D = q.shape
    Sk = k.shape[0]
    H = num_heads
    hd = D // H

    allow = None
    if causal:
        row = lax.broadcasted_iota(jnp.int32, (Sq, Sk), 0)
        col = lax.broadcasted_iota(jnp.int32, (Sq, Sk), 1)
        allow = col <= row                     # computed once, reused per head

    ctx_heads = []
    for h in range(H):
        sl = slice(h * hd, (h + 1) * hd)
        # scores_h = q_h @ k_h^T (contraction on last axes, no explicit k.T)
        s = lax.dot_general(q[:, sl], k[:, sl],
                            dimension_numbers=(((1,), (1,)), ((), ())),
                            preferred_element_type=jnp.float32)     # [Sq, Sk]
        if causal:
            s = jnp.where(allow, s, -1e9)
        s = s - jnp.max(s, axis=-1, keepdims=True)
        e = jnp.exp(s)
        p = e * pl.reciprocal(jnp.sum(e, axis=-1, keepdims=True), approx=True)
        attn_ref[0, h] = p                                          # f32 weights out
        ctx_heads.append(jnp.dot(p.astype(MXU_DTYPE), v[:, sl],
                                 preferred_element_type=jnp.float32))  # [Sq, hd]
    # Heads re-assembled into one [Sq, D] slab -> single K=D output projection.
    return jnp.concatenate(ctx_heads, axis=-1)


# ----------------------------- Pallas kernels ------------------------------- #

def _enc_layer_kernel(x_ref, wqkv_ref, bqkv_ref, wo_ref, bo_ref, g0_ref, be0_ref,
                      w1_ref, b1_ref, w2_ref, b2_ref, g1_ref, be1_ref,
                      y_ref, attn_ref, *, num_heads, scale):
    x = x_ref[0]                                                    # [S, D] f32
    D = x.shape[-1]

    # fused QKV projection (one MXU op, bf16 weights)
    qkv = jnp.dot(x.astype(MXU_DTYPE), wqkv_ref[...],
                  preferred_element_type=jnp.float32) + bqkv_ref[...]
    q = (qkv[:, :D] * scale).astype(MXU_DTYPE)       # scale folded into q
    k = qkv[:, D:2 * D].astype(MXU_DTYPE)
    v = qkv[:, 2 * D:].astype(MXU_DTYPE)

    ctx = _sdpa_heads(q, k, v, attn_ref, num_heads=num_heads, causal=False)
    attn_out = jnp.dot(ctx.astype(MXU_DTYPE), wo_ref[...],
                       preferred_element_type=jnp.float32) + bo_ref[...]
    h1 = _layernorm_res(x, attn_out, g0_ref[...], be0_ref[...])

    # feed-forward + add & norm (stays VMEM-resident)
    hid = jnp.dot(h1.astype(MXU_DTYPE), w1_ref[...],
                  preferred_element_type=jnp.float32) + b1_ref[...]
    hid = jnp.maximum(hid, 0.0)
    ffn = jnp.dot(hid.astype(MXU_DTYPE), w2_ref[...],
                  preferred_element_type=jnp.float32) + b2_ref[...]
    y_ref[0] = _layernorm_res(h1, ffn, g1_ref[...], be1_ref[...])


def _dec_layer_kernel(x_ref, enc_ref,
                      wqkv_ref, bqkv_ref, wo1_ref, bo1_ref, g0_ref, be0_ref,
                      wq_ref, bq_ref, wkv_ref, bkv_ref, wo2_ref, bo2_ref, g1_ref, be1_ref,
                      w1_ref, b1_ref, w2_ref, b2_ref, g2_ref, be2_ref,
                      y_ref, self_attn_ref, cross_attn_ref, *, num_heads, scale):
    x = x_ref[0]                                                    # [T, D]
    enc = enc_ref[0]                                                # [S, D]
    D = x.shape[-1]

    # ---- masked (causal) self attention + add & norm ----
    qkv = jnp.dot(x.astype(MXU_DTYPE), wqkv_ref[...],
                  preferred_element_type=jnp.float32) + bqkv_ref[...]
    q = (qkv[:, :D] * scale).astype(MXU_DTYPE)
    k = qkv[:, D:2 * D].astype(MXU_DTYPE)
    v = qkv[:, 2 * D:].astype(MXU_DTYPE)
    ctx1 = _sdpa_heads(q, k, v, self_attn_ref, num_heads=num_heads, causal=True)
    self_out = jnp.dot(ctx1.astype(MXU_DTYPE), wo1_ref[...],
                       preferred_element_type=jnp.float32) + bo1_ref[...]
    h1 = _layernorm_res(x, self_out, g0_ref[...], be0_ref[...])

    # ---- cross attention (q from decoder, k/v from encoder output) ----
    qc = jnp.dot(h1.astype(MXU_DTYPE), wq_ref[...],
                 preferred_element_type=jnp.float32) + bq_ref[...]
    qc = (qc * scale).astype(MXU_DTYPE)
    kv = jnp.dot(enc.astype(MXU_DTYPE), wkv_ref[...],
                 preferred_element_type=jnp.float32) + bkv_ref[...]
    kc = kv[:, :D].astype(MXU_DTYPE)
    vc = kv[:, D:].astype(MXU_DTYPE)
    ctx2 = _sdpa_heads(qc, kc, vc, cross_attn_ref, num_heads=num_heads, causal=False)
    cross_out = jnp.dot(ctx2.astype(MXU_DTYPE), wo2_ref[...],
                        preferred_element_type=jnp.float32) + bo2_ref[...]
    h2 = _layernorm_res(h1, cross_out, g1_ref[...], be1_ref[...])

    # ---- feed forward + add & norm ----
    hid = jnp.dot(h2.astype(MXU_DTYPE), w1_ref[...],
                  preferred_element_type=jnp.float32) + b1_ref[...]
    hid = jnp.maximum(hid, 0.0)
    ffn = jnp.dot(hid.astype(MXU_DTYPE), w2_ref[...],
                  preferred_element_type=jnp.float32) + b2_ref[...]
    y_ref[0] = _layernorm_res(h2, ffn, g2_ref[...], be2_ref[...])


def _linear_kernel(x_ref, w_ref, b_ref, o_ref):
    o_ref[...] = jnp.dot(x_ref[...].astype(MXU_DTYPE), w_ref[...],
                         preferred_element_type=jnp.float32) + b_ref[...]


# ----------------------------- kernel wrappers ------------------------------ #

def encoder_layer(x, lyr, num_heads):
    B, S, D = x.shape
    H = num_heads
    mha, ffn, ln0, ln1 = lyr["mha"], lyr["ffn"], lyr["ln0"], lyr["ln1"]
    d_ff = ffn["w1"].shape[1]
    scale = 1.0 / math.sqrt(D // H)
    c2 = lambda b: (0, 0)
    y, attn = pl.pallas_call(
        partial(_enc_layer_kernel, num_heads=H, scale=scale),
        out_shape=(jax.ShapeDtypeStruct((B, S, D), jnp.float32),
                   jax.ShapeDtypeStruct((B, H, S, S), jnp.float32)),
        grid=(B,),
        in_specs=[
            pl.BlockSpec((1, S, D), lambda b: (b, 0, 0)),
            pl.BlockSpec((D, 3 * D), c2), pl.BlockSpec((1, 3 * D), c2),
            pl.BlockSpec((D, D), c2), pl.BlockSpec((1, D), c2),
            pl.BlockSpec((1, D), c2), pl.BlockSpec((1, D), c2),
            pl.BlockSpec((D, d_ff), c2), pl.BlockSpec((1, d_ff), c2),
            pl.BlockSpec((d_ff, D), c2), pl.BlockSpec((1, D), c2),
            pl.BlockSpec((1, D), c2), pl.BlockSpec((1, D), c2),
        ],
        out_specs=(
            pl.BlockSpec((1, S, D), lambda b: (b, 0, 0)),
            pl.BlockSpec((1, H, S, S), lambda b: (b, 0, 0, 0)),
        ),
        compiler_params=_cparams(1),
    )(x,
      mha["wqkv"], mha["bqkv"], mha["wo"], mha["bo"],
      ln0["gamma"], ln0["beta"],
      ffn["w1"], ffn["b1"], ffn["w2"], ffn["b2"],
      ln1["gamma"], ln1["beta"])
    return y, attn


def decoder_layer(x, enc_out, lyr, num_heads):
    B, T, D = x.shape
    S = enc_out.shape[1]
    H = num_heads
    mha1, mha2, ffn = lyr["mha1"], lyr["mha2"], lyr["ffn"]
    ln0, ln1, ln2 = lyr["ln0"], lyr["ln1"], lyr["ln2"]
    d_ff = ffn["w1"].shape[1]
    scale = 1.0 / math.sqrt(D // H)
    c2 = lambda b: (0, 0)
    y, self_attn, cross_attn = pl.pallas_call(
        partial(_dec_layer_kernel, num_heads=H, scale=scale),
        out_shape=(jax.ShapeDtypeStruct((B, T, D), jnp.float32),
                   jax.ShapeDtypeStruct((B, H, T, T), jnp.float32),
                   jax.ShapeDtypeStruct((B, H, T, S), jnp.float32)),
        grid=(B,),
        in_specs=[
            pl.BlockSpec((1, T, D), lambda b: (b, 0, 0)),
            pl.BlockSpec((1, S, D), lambda b: (b, 0, 0)),
            # self-attention params
            pl.BlockSpec((D, 3 * D), c2), pl.BlockSpec((1, 3 * D), c2),
            pl.BlockSpec((D, D), c2), pl.BlockSpec((1, D), c2),
            pl.BlockSpec((1, D), c2), pl.BlockSpec((1, D), c2),
            # cross-attention params
            pl.BlockSpec((D, D), c2), pl.BlockSpec((1, D), c2),
            pl.BlockSpec((D, 2 * D), c2), pl.BlockSpec((1, 2 * D), c2),
            pl.BlockSpec((D, D), c2), pl.BlockSpec((1, D), c2),
            pl.BlockSpec((1, D), c2), pl.BlockSpec((1, D), c2),
            # feed-forward params
            pl.BlockSpec((D, d_ff), c2), pl.BlockSpec((1, d_ff), c2),
            pl.BlockSpec((d_ff, D), c2), pl.BlockSpec((1, D), c2),
            pl.BlockSpec((1, D), c2), pl.BlockSpec((1, D), c2),
        ],
        out_specs=(
            pl.BlockSpec((1, T, D), lambda b: (b, 0, 0)),
            pl.BlockSpec((1, H, T, T), lambda b: (b, 0, 0, 0)),
            pl.BlockSpec((1, H, T, S), lambda b: (b, 0, 0, 0)),
        ),
        compiler_params=_cparams(1),
    )(x, enc_out,
      mha1["wqkv"], mha1["bqkv"], mha1["wo"], mha1["bo"],
      ln0["gamma"], ln0["beta"],
      mha2["wq"], mha2["bq"], mha2["wkv"], mha2["bkv"], mha2["wo"], mha2["bo"],
      ln1["gamma"], ln1["beta"],
      ffn["w1"], ffn["b1"], ffn["w2"], ffn["b2"],
      ln2["gamma"], ln2["beta"])
    return y, self_attn, cross_attn


def final_linear(x, w, b):
    """x:[B,S,D] f32, w:[D,V] bf16, b:[1,V] f32 -> [B,S,V] f32.

    Rows are flattened to (B*S, D) and tiled on (rows, vocab) so the weight
    never needs to be fully VMEM-resident at large V and output stores stay
    lane-dense when V is 128-aligned."""
    B, S, D = x.shape
    V = w.shape[1]
    M = B * S
    x2 = x.reshape(M, D)

    tm = M
    for cand in (512, 256, 128, 64, 32, 16, 8):
        if M % cand == 0:
            tm = cand
            break
    tn = V
    for cand in (2048, 1024, 512, 256, 128):
        if V % cand == 0:
            tn = cand
            break

    out = pl.pallas_call(
        _linear_kernel,
        out_shape=jax.ShapeDtypeStruct((M, V), jnp.float32),
        grid=(M // tm, V // tn),
        in_specs=[
            pl.BlockSpec((tm, D), lambda i, j: (i, 0)),
            pl.BlockSpec((D, tn), lambda i, j: (0, j)),
            pl.BlockSpec((1, tn), lambda i, j: (0, j)),
        ],
        out_specs=pl.BlockSpec((tm, tn), lambda i, j: (i, j)),
        compiler_params=_cparams(2),
    )(x2, w, b)
    return out.reshape(B, S, V)


# ----------------------------- parameter init ------------------------------- #

def _rand_w(key, d_in, d_out):
    # weights stored bf16 (halved DMA / VMEM footprint); accumulation stays f32
    return (jax.random.normal(key, (d_in, d_out), jnp.float32) * 0.02).astype(MXU_DTYPE)


def _rand_b(key, n):
    return jax.random.normal(key, (1, n), jnp.float32) * 0.02


def _init_self_mha(key, d_model):
    ks = jax.random.split(key, 8)
    wqkv = jnp.concatenate([_rand_w(ks[0], d_model, d_model),
                            _rand_w(ks[1], d_model, d_model),
                            _rand_w(ks[2], d_model, d_model)], axis=1)
    bqkv = jnp.concatenate([_rand_b(ks[4], d_model), _rand_b(ks[5], d_model),
                            _rand_b(ks[6], d_model)], axis=1)
    return {"wqkv": wqkv, "bqkv": bqkv,
            "wo": _rand_w(ks[3], d_model, d_model), "bo": _rand_b(ks[7], d_model)}


def _init_cross_mha(key, d_model):
    ks = jax.random.split(key, 8)
    wkv = jnp.concatenate([_rand_w(ks[1], d_model, d_model),
                           _rand_w(ks[2], d_model, d_model)], axis=1)
    bkv = jnp.concatenate([_rand_b(ks[5], d_model), _rand_b(ks[6], d_model)], axis=1)
    return {"wq": _rand_w(ks[0], d_model, d_model), "bq": _rand_b(ks[4], d_model),
            "wkv": wkv, "bkv": bkv,
            "wo": _rand_w(ks[3], d_model, d_model), "bo": _rand_b(ks[7], d_model)}


def _init_ln(d_model):
    return {"gamma": jnp.ones((1, d_model), jnp.float32),
            "beta": jnp.zeros((1, d_model), jnp.float32)}


def _init_ffn(key, d_model, d_ff):
    k1, k2, k3, k4 = jax.random.split(key, 4)
    return {"w1": _rand_w(k1, d_model, d_ff), "b1": _rand_b(k3, d_ff),
            "w2": _rand_w(k2, d_ff, d_model), "b2": _rand_b(k4, d_model)}


def _init_enc_layer(key, d_model, d_ff):
    k1, k2 = jax.random.split(key)
    return {"mha": _init_self_mha(k1, d_model), "ffn": _init_ffn(k2, d_model, d_ff),
            "ln0": _init_ln(d_model), "ln1": _init_ln(d_model)}


def _init_dec_layer(key, d_model, d_ff):
    k1, k2, k3 = jax.random.split(key, 3)
    return {"mha1": _init_self_mha(k1, d_model), "mha2": _init_cross_mha(k2, d_model),
            "ffn": _init_ffn(k3, d_model, d_ff),
            "ln0": _init_ln(d_model), "ln1": _init_ln(d_model), "ln2": _init_ln(d_model)}


def positional_encoding(max_len, d_model):
    pos = jnp.arange(max_len, dtype=jnp.float32)[:, None]
    div = jnp.exp(jnp.arange(0, d_model, 2, dtype=jnp.float32)
                  * -(math.log(10000.0) / d_model))
    enc = jnp.zeros((max_len, d_model), jnp.float32)
    enc = enc.at[:, 0::2].set(jnp.sin(pos * div))
    enc = enc.at[:, 1::2].set(jnp.cos(pos * div))
    return enc


def init_transformer(key, src_vocab, tgt_vocab, d_model, num_heads,
                     n_enc, n_dec, d_ff, max_len=64):
    keys = jax.random.split(key, 4 + n_enc + n_dec)
    return {
        "src_emb": jax.random.normal(keys[0], (src_vocab, d_model), jnp.float32),
        "tgt_emb": jax.random.normal(keys[1], (tgt_vocab, d_model), jnp.float32),
        "pos_enc": positional_encoding(max_len, d_model),
        "fc_w": _rand_w(keys[2], d_model, tgt_vocab),
        "fc_b": jnp.zeros((1, tgt_vocab), jnp.float32),
        "enc_layers": [_init_enc_layer(keys[3 + i], d_model, d_ff) for i in range(n_enc)],
        "dec_layers": [_init_dec_layer(keys[3 + n_enc + i], d_model, d_ff) for i in range(n_dec)],
        "num_heads": num_heads,
    }


# ------------------------------- forward ------------------------------------ #

def transformer_forward(params, src, tgt):
    num_heads = params["num_heads"]
    B, S = src.shape
    _, T = tgt.shape
    d_model = params["src_emb"].shape[1]
    emb_scale = math.sqrt(d_model)

    # token embedding gather + positional encoding stay in plain JAX (tiny gather,
    # no clean Pallas win); no mask tensors are ever materialized in HBM.
    pe = params["pos_enc"]
    src_x = jnp.take(params["src_emb"], src, axis=0) * emb_scale + pe[None, :S, :]
    tgt_x = jnp.take(params["tgt_emb"], tgt, axis=0) * emb_scale + pe[None, :T, :]

    # ---- encoder: ONE fused pallas_call per layer ----
    x = src_x
    enc_attn_ws = []
    for lyr in params["enc_layers"]:
        x, aw = encoder_layer(x, lyr, num_heads)
        enc_attn_ws.append(aw)
    enc_out = x

    # ---- decoder: ONE fused pallas_call per layer ----
    y = tgt_x
    dec_attn_ws, dec_enc_ws = [], []
    for lyr in params["dec_layers"]:
        y, aw1, aw2 = decoder_layer(y, enc_out, lyr, num_heads)
        dec_attn_ws.append(aw1)
        dec_enc_ws.append(aw2)

    out = final_linear(y, params["fc_w"], params["fc_b"])
    return out, enc_attn_ws, dec_attn_ws, dec_enc_ws


# --------------------------------- main -------------------------------------- #

if __name__ == "__main__":
    B, S, T = 2, 8, 8
    d_model, num_heads, d_ff = 32, 4, 64
    n_enc, n_dec = 2, 2
    src_vocab, tgt_vocab = 50, 60

    key = jax.random.PRNGKey(0)
    k_param, k_src, k_tgt = jax.random.split(key, 3)

    params = init_transformer(k_param, src_vocab, tgt_vocab, d_model, num_heads,
                              n_enc, n_dec, d_ff, max_len=64)
    src = jax.random.randint(k_src, (B, S), 0, src_vocab, dtype=jnp.int32)
    tgt = jax.random.randint(k_tgt, (B, T), 0, tgt_vocab, dtype=jnp.int32)

    out, enc_w, dec_w, dec_enc_w = transformer_forward(params, src, tgt)
    jax.block_until_ready(out)
    jax.block_until_ready(enc_w)
    jax.block_until_ready(dec_w)
    jax.block_until_ready(dec_enc_w)

    assert out.shape == (B, T, tgt_vocab)
    assert enc_w[0].shape == (B, num_heads, S, S)
    assert dec_w[0].shape == (B, num_heads, T, T)
    assert dec_enc_w[0].shape == (B, num_heads, T, S)
    assert bool(jnp.all(jnp.isfinite(out)))
    # attention rows should sum to ~1 (approx reciprocal => loose tolerance)
    assert bool(jnp.all(jnp.abs(jnp.sum(enc_w[0], axis=-1) - 1.0) < 1e-2))
    print("KERNEL_OK")
</pallas_src>

<mosaic_0001>
module attributes {stable_mosaic.version = 11 : i64} {
  func.func @_enc_layer_kernel(%arg0: i32, %arg1: memref<1x8x32xf32, #tpu.memory_space<vmem>>, %arg2: memref<32x96xbf16, #tpu.memory_space<vmem>>, %arg3: memref<1x96xf32, #tpu.memory_space<vmem>>, %arg4: memref<32x32xbf16, #tpu.memory_space<vmem>>, %arg5: memref<1x32xf32, #tpu.memory_space<vmem>>, %arg6: memref<1x32xf32, #tpu.memory_space<vmem>>, %arg7: memref<1x32xf32, #tpu.memory_space<vmem>>, %arg8: memref<32x64xbf16, #tpu.memory_space<vmem>>, %arg9: memref<1x64xf32, #tpu.memory_space<vmem>>, %arg10: memref<64x32xbf16, #tpu.memory_space<vmem>>, %arg11: memref<1x32xf32, #tpu.memory_space<vmem>>, %arg12: memref<1x32xf32, #tpu.memory_space<vmem>>, %arg13: memref<1x32xf32, #tpu.memory_space<vmem>>, %arg14: memref<1x8x32xf32, #tpu.memory_space<vmem>>, %arg15: memref<1x4x8x8xf32, #tpu.memory_space<vmem>>) attributes {dimension_semantics = [#tpu.dimension_semantics<parallel>], iteration_bounds = array<i64: 2>, scalar_prefetch = 0 : i64, scratch_operands = 0 : i64, tpu.core_type = #tpu.core_type<tc>, window_params = [{transform_indices = @transform_0, window_bounds = array<i64: 1, 8, 32>}, {pipeline_mode = #tpu.pipeline_mode<synchronous>, transform_indices = @transform_1, window_bounds = array<i64: 32, 96>}, {pipeline_mode = #tpu.pipeline_mode<synchronous>, transform_indices = @transform_2, window_bounds = array<i64: 1, 96>}, {pipeline_mode = #tpu.pipeline_mode<synchronous>, transform_indices = @transform_3, window_bounds = array<i64: 32, 32>}, {pipeline_mode = #tpu.pipeline_mode<synchronous>, transform_indices = @transform_4, window_bounds = array<i64: 1, 32>}, {pipeline_mode = #tpu.pipeline_mode<synchronous>, transform_indices = @transform_5, window_bounds = array<i64: 1, 32>}, {pipeline_mode = #tpu.pipeline_mode<synchronous>, transform_indices = @transform_6, window_bounds = array<i64: 1, 32>}, {pipeline_mode = #tpu.pipeline_mode<synchronous>, transform_indices = @transform_7, window_bounds = array<i64: 32, 64>}, {pipeline_mode = #tpu.pipeline_mode<synchronous>, transform_indices = @transform_8, window_bounds = array<i64: 1, 64>}, {pipeline_mode = #tpu.pipeline_mode<synchronous>, transform_indices = @transform_9, window_bounds = array<i64: 64, 32>}, {pipeline_mode = #tpu.pipeline_mode<synchronous>, transform_indices = @transform_10, window_bounds = array<i64: 1, 32>}, {pipeline_mode = #tpu.pipeline_mode<synchronous>, transform_indices = @transform_11, window_bounds = array<i64: 1, 32>}, {pipeline_mode = #tpu.pipeline_mode<synchronous>, transform_indices = @transform_12, window_bounds = array<i64: 1, 32>}, {transform_indices = @transform_13, window_bounds = array<i64: 1, 8, 32>}, {transform_indices = @transform_14, window_bounds = array<i64: 1, 4, 8, 8>}]} {
    %c0 = arith.constant 0 : index
    %c0_0 = arith.constant 0 : index
    %c0_1 = arith.constant 0 : index
    %0 = vector.load %arg1[%c0, %c0_0, %c0_1] : memref<1x8x32xf32, #tpu.memory_space<vmem>>, vector<1x8x32xf32>
    %1 = vector.shape_cast %0 : vector<1x8x32xf32> to vector<8x32xf32>
    %2 = arith.truncf %1 : vector<8x32xf32> to vector<8x32xbf16>
    %c0_2 = arith.constant 0 : index
    %c0_3 = arith.constant 0 : index
    %3 = vector.load %arg2[%c0_2, %c0_3] : memref<32x96xbf16, #tpu.memory_space<vmem>>, vector<32x96xbf16>
    %cst = arith.constant dense<0.000000e+00> : vector<8x96xf32>
    %4 = tpu.matmul %2, %3, %cst {dimension_numbers = #tpu.dot_dimension_numbers<[1], [0], [0], [1], [0, 0, 1, 1], [], []>} : vector<8x32xbf16>, vector<32x96xbf16>, vector<8x96xf32> -> vector<8x96xf32>
    %c0_4 = arith.constant 0 : index
    %c0_5 = arith.constant 0 : index
    %5 = vector.load %arg3[%c0_4, %c0_5] : memref<1x96xf32, #tpu.memory_space<vmem>>, vector<1x96xf32>
    %6 = vector.broadcast %5 : vector<1x96xf32> to vector<8x96xf32>
    %7 = arith.addf %4, %6 : vector<8x96xf32>
    %8 = vector.extract_strided_slice %7 {offsets = [0, 0], sizes = [8, 32], strides = [1, 1]} : vector<8x96xf32> to vector<8x32xf32>
    %cst_6 = arith.constant 0.353553385 : f32
    %9 = vector.broadcast %cst_6 : f32 to vector<8x32xf32>
    %10 = arith.mulf %8, %9 : vector<8x32xf32>
    %11 = arith.truncf %10 : vector<8x32xf32> to vector<8x32xbf16>
    %12 = vector.extract_strided_slice %7 {offsets = [0, 32], sizes = [8, 32], strides = [1, 1]} : vector<8x96xf32> to vector<8x32xf32>
    %13 = arith.truncf %12 : vector<8x32xf32> to vector<8x32xbf16>
    %14 = vector.extract_strided_slice %7 {offsets = [0, 64], sizes = [8, 32], strides = [1, 1]} : vector<8x96xf32> to vector<8x32xf32>
    %15 = arith.truncf %14 : vector<8x32xf32> to vector<8x32xbf16>
    %16 = vector.extract_strided_slice %11 {offsets = [0, 0], sizes = [8, 8], strides = [1, 1]} : vector<8x32xbf16> to vector<8x8xbf16>
    %17 = vector.extract_strided_slice %13 {offsets = [0, 0], sizes = [8, 8], strides = [1, 1]} : vector<8x32xbf16> to vector<8x8xbf16>
    %cst_7 = arith.constant dense<0.000000e+00> : vector<8x8xf32>
    %18 = tpu.matmul %16, %17, %cst_7 {dimension_numbers = #tpu.dot_dimension_numbers<[1], [1], [0], [0], [0, 0, 1, 0], [], []>} : vector<8x8xbf16>, vector<8x8xbf16>, vector<8x8xf32> -> vector<8x8xf32>
    %cst_8 = arith.constant dense<0xFF800000> : vector<8xf32>
    %19 = vector.multi_reduction <maximumf>, %18, %cst_8 [1] : vector<8x8xf32> to vector<8xf32>
    %20 = vector.shape_cast %19 : vector<8xf32> to vector<8x1xf32>
    %21 = vector.broadcast %20 : vector<8x1xf32> to vector<8x8xf32>
    %22 = arith.subf %18, %21 : vector<8x8xf32>
    %23 = math.exp %22 : vector<8x8xf32>
    %cst_9 = arith.constant dense<0.000000e+00> : vector<8xf32>
    %24 = vector.multi_reduction <add>, %23, %cst_9 [1] : vector<8x8xf32> to vector<8xf32>
    %25 = vector.shape_cast %24 : vector<8xf32> to vector<8x1xf32>
    %26 = tpu.reciprocal %25 {approx = true} : vector<8x1xf32> -> vector<8x1xf32>
    %27 = vector.broadcast %26 : vector<8x1xf32> to vector<8x8xf32>
    %28 = arith.mulf %23, %27 : vector<8x8xf32>
    %c0_10 = arith.constant 0 : index
    %c0_11 = arith.constant 0 : index
    %c0_12 = arith.constant 0 : index
    %c0_13 = arith.constant 0 : index
    %29 = vector.load %arg15[%c0_10, %c0_11, %c0_12, %c0_13] : memref<1x4x8x8xf32, #tpu.memory_space<vmem>>, vector<1x1x8x8xf32>
    %30 = vector.shape_cast %29 : vector<1x1x8x8xf32> to vector<8x8xf32>
    %31 = vector.shape_cast %28 : vector<8x8xf32> to vector<1x1x8x8xf32>
    tpu.vector_store %arg15[%c0_10, %c0_11, %c0_12, %c0_13], %31 {strides = array<i32>} : memref<1x4x8x8xf32, #tpu.memory_space<vmem>>, vector<1x1x8x8xf32>,
    %32 = arith.truncf %28 : vector<8x8xf32> to vector<8x8xbf16>
    %33 = vector.extract_strided_slice %15 {offsets = [0, 0], sizes = [8, 8], strides = [1, 1]} : vector<8x32xbf16> to vector<8x8xbf16>
    %cst_14 = arith.constant dense<0.000000e+00> : vector<8x8xf32>
    %34 = tpu.matmul %32, %33, %cst_14 {dimension_numbers = #tpu.dot_dimension_numbers<[1], [0], [0], [1], [0, 0, 1, 1], [], []>} : vector<8x8xbf16>, vector<8x8xbf16>, vector<8x8xf32> -> vector<8x8xf32>
    %35 = vector.extract_strided_slice %11 {offsets = [0, 8], sizes = [8, 8], strides = [1, 1]} : vector<8x32xbf16> to vector<8x8xbf16>
    %36 = vector.extract_strided_slice %13 {offsets = [0, 8], sizes = [8, 8], strides = [1, 1]} : vector<8x32xbf16> to vector<8x8xbf16>
    %cst_15 = arith.constant dense<0.000000e+00> : vector<8x8xf32>
    %37 = tpu.matmul %35, %36, %cst_15 {dimension_numbers = #tpu.dot_dimension_numbers<[1], [1], [0], [0], [0, 0, 1, 0], [], []>} : vector<8x8xbf16>, vector<8x8xbf16>, vector<8x8xf32> -> vector<8x8xf32>
    %cst_16 = arith.constant dense<0xFF800000> : vector<8xf32>
    %38 = vector.multi_reduction <maximumf>, %37, %cst_16 [1] : vector<8x8xf32> to vector<8xf32>
    %39 = vector.shape_cast %38 : vector<8xf32> to vector<8x1xf32>
    %40 = vector.broadcast %39 : vector<8x1xf32> to vector<8x8xf32>
    %41 = arith.subf %37, %40 : vector<8x8xf32>
    %42 = math.exp %41 : vector<8x8xf32>
    %cst_17 = arith.constant dense<0.000000e+00> : vector<8xf32>
    %43 = vector.multi_reduction <add>, %42, %cst_17 [1] : vector<8x8xf32> to vector<8xf32>
    %44 = vector.shape_cast %43 : vector<8xf32> to vector<8x1xf32>
    %45 = tpu.reciprocal %44 {approx = true} : vector<8x1xf32> -> vector<8x1xf32>
    %46 = vector.broadcast %45 : vector<8x1xf32> to vector<8x8xf32>
    %47 = arith.mulf %42, %46 : vector<8x8xf32>
    %c0_18 = arith.constant 0 : index
    %c1 = arith.constant 1 : index
    %c0_19 = arith.constant 0 : index
    %c0_20 = arith.constant 0 : index
    %48 = vector.load %arg15[%c0_18, %c1, %c0_19, %c0_20] : memref<1x4x8x8xf32, #tpu.memory_space<vmem>>, vector<1x1x8x8xf32>
    %49 = vector.shape_cast %48 : vector<1x1x8x8xf32> to vector<8x8xf32>
    %50 = vector.shape_cast %47 : vector<8x8xf32> to vector<1x1x8x8xf32>
    tpu.vector_store %arg15[%c0_18, %c1, %c0_19, %c0_20], %50 {strides = array<i32>} : memref<1x4x8x8xf32, #tpu.memory_space<vmem>>, vector<1x1x8x8xf32>,
    %51 = arith.truncf %47 : vector<8x8xf32> to vector<8x8xbf16>
    %52 = vector.extract_strided_slice %15 {offsets = [0, 8], sizes = [8, 8], strides = [1, 1]} : vector<8x32xbf16> to vector<8x8xbf16>
    %cst_21 = arith.constant dense<0.000000e+00> : vector<8x8xf32>
    %53 = tpu.matmul %51, %52, %cst_21 {dimension_numbers = #tpu.dot_dimension_numbers<[1], [0], [0], [1], [0, 0, 1, 1], [], []>} : vector<8x8xbf16>, vector<8x8xbf16>, vector<8x8xf32> -> vector<8x8xf32>
    %54 = vector.extract_strided_slice %11 {offsets = [0, 16], sizes = [8, 8], strides = [1, 1]} : vector<8x32xbf16> to vector<8x8xbf16>
    %55 = vector.extract_strided_slice %13 {offsets = [0, 16], sizes = [8, 8], strides = [1, 1]} : vector<8x32xbf16> to vector<8x8xbf16>
    %cst_22 = arith.constant dense<0.000000e+00> : vector<8x8xf32>
    %56 = tpu.matmul %54, %55, %cst_22 {dimension_numbers = #tpu.dot_dimension_numbers<[1], [1], [0], [0], [0, 0, 1, 0], [], []>} : vector<8x8xbf16>, vector<8x8xbf16>, vector<8x8xf32> -> vector<8x8xf32>
    %cst_23 = arith.constant dense<0xFF800000> : vector<8xf32>
    %57 = vector.multi_reduction <maximumf>, %56, %cst_23 [1] : vector<8x8xf32> to vector<8xf32>
    %58 = vector.shape_cast %57 : vector<8xf32> to vector<8x1xf32>
    %59 = vector.broadcast %58 : vector<8x1xf32> to vector<8x8xf32>
    %60 = arith.subf %56, %59 : vector<8x8xf32>
    %61 = math.exp %60 : vector<8x8xf32>
    %cst_24 = arith.constant dense<0.000000e+00> : vector<8xf32>
    %62 = vector.multi_reduction <add>, %61, %cst_24 [1] : vector<8x8xf32> to vector<8xf32>
    %63 = vector.shape_cast %62 : vector<8xf32> to vector<8x1xf32>
    %64 = tpu.reciprocal %63 {approx = true} : vector<8x1xf32> -> vector<8x1xf32>
    %65 = vector.broadcast %64 : vector<8x1xf32> to vector<8x8xf32>
    %66 = arith.mulf %61, %65 : vector<8x8xf32>
    %c0_25 = arith.constant 0 : index
    %c2 = arith.constant 2 : index
    %c0_26 = arith.constant 0 : index
    %c0_27 = arith.constant 0 : index
    %67 = vector.load %arg15[%c0_25, %c2, %c0_26, %c0_27] : memref<1x4x8x8xf32, #tpu.memory_space<vmem>>, vector<1x1x8x8xf32>
    %68 = vector.shape_cast %67 : vector<1x1x8x8xf32> to vector<8x8xf32>
    %69 = vector.shape_cast %66 : vector<8x8xf32> to vector<1x1x8x8xf32>
    tpu.vector_store %arg15[%c0_25, %c2, %c0_26, %c0_27], %69 {strides = array<i32>} : memref<1x4x8x8xf32, #tpu.memory_space<vmem>>, vector<1x1x8x8xf32>,
    %70 = arith.truncf %66 : vector<8x8xf32> to vector<8x8xbf16>
    %71 = vector.extract_strided_slice %15 {offsets = [0, 16], sizes = [8, 8], strides = [1, 1]} : vector<8x32xbf16> to vector<8x8xbf16>
    %cst_28 = arith.constant dense<0.000000e+00> : vector<8x8xf32>
    %72 = tpu.matmul %70, %71, %cst_28 {dimension_numbers = #tpu.dot_dimension_numbers<[1], [0], [0], [1], [0, 0, 1, 1], [], []>} : vector<8x8xbf16>, vector<8x8xbf16>, vector<8x8xf32> -> vector<8x8xf32>
    %73 = vector.extract_strided_slice %11 {offsets = [0, 24], sizes = [8, 8], strides = [1, 1]} : vector<8x32xbf16> to vector<8x8xbf16>
    %74 = vector.extract_strided_slice %13 {offsets = [0, 24], sizes = [8, 8], strides = [1, 1]} : vector<8x32xbf16> to vector<8x8xbf16>
    %cst_29 = arith.constant dense<0.000000e+00> : vector<8x8xf32>
    %75 = tpu.matmul %73, %74, %cst_29 {dimension_numbers = #tpu.dot_dimension_numbers<[1], [1], [0], [0], [0, 0, 1, 0], [], []>} : vector<8x8xbf16>, vector<8x8xbf16>, vector<8x8xf32> -> vector<8x8xf32>
    %cst_30 = arith.constant dense<0xFF800000> : vector<8xf32>
    %76 = vector.multi_reduction <maximumf>, %75, %cst_30 [1] : vector<8x8xf32> to vector<8xf32>
    %77 = vector.shape_cast %76 : vector<8xf32> to vector<8x1xf32>
    %78 = vector.broadcast %77 : vector<8x1xf32> to vector<8x8xf32>
    %79 = arith.subf %75, %78 : vector<8x8xf32>
    %80 = math.exp %79 : vector<8x8xf32>
    %cst_31 = arith.constant dense<0.000000e+00> : vector<8xf32>
    %81 = vector.multi_reduction <add>, %80, %cst_31 [1] : vector<8x8xf32> to vector<8xf32>
    %82 = vector.shape_cast %81 : vector<8xf32> to vector<8x1xf32>
    %83 = tpu.reciprocal %82 {approx = true} : vector<8x1xf32> -> vector<8x1xf32>
    %84 = vector.broadcast %83 : vector<8x1xf32> to vector<8x8xf32>
    %85 = arith.mulf %80, %84 : vector<8x8xf32>
    %c0_32 = arith.constant 0 : index
    %c3 = arith.constant 3 : index
    %c0_33 = arith.constant 0 : index
    %c0_34 = arith.constant 0 : index
    %86 = vector.load %arg15[%c0_32, %c3, %c0_33, %c0_34] : memref<1x4x8x8xf32, #tpu.memory_space<vmem>>, vector<1x1x8x8xf32>
    %87 = vector.shape_cast %86 : vector<1x1x8x8xf32> to vector<8x8xf32>
    %88 = vector.shape_cast %85 : vector<8x8xf32> to vector<1x1x8x8xf32>
    tpu.vector_store %arg15[%c0_32, %c3, %c0_33, %c0_34], %88 {strides = array<i32>} : memref<1x4x8x8xf32, #tpu.memory_space<vmem>>, vector<1x1x8x8xf32>,
    %89 = arith.truncf %85 : vector<8x8xf32> to vector<8x8xbf16>
    %90 = vector.extract_strided_slice %15 {offsets = [0, 24], sizes = [8, 8], strides = [1, 1]} : vector<8x32xbf16> to vector<8x8xbf16>
    %cst_35 = arith.constant dense<0.000000e+00> : vector<8x8xf32>
    %91 = tpu.matmul %89, %90, %cst_35 {dimension_numbers = #tpu.dot_dimension_numbers<[1], [0], [0], [1], [0, 0, 1, 1], [], []>} : vector<8x8xbf16>, vector<8x8xbf16>, vector<8x8xf32> -> vector<8x8xf32>
    %92 = tpu.concatenate %34, %53, %72, %91 in 1 : vector<8x8xf32>, vector<8x8xf32>, vector<8x8xf32>, vector<8x8xf32> -> vector<8x32xf32>
    %93 = arith.truncf %92 : vector<8x32xf32> to vector<8x32xbf16>
    %c0_36 = arith.constant 0 : index
    %c0_37 = arith.constant 0 : index
    %94 = vector.load %arg4[%c0_36, %c0_37] : memref<32x32xbf16, #tpu.memory_space<vmem>>, vector<32x32xbf16>
    %cst_38 = arith.constant dense<0.000000e+00> : vector<8x32xf32>
    %95 = tpu.matmul %93, %94, %cst_38 {dimension_numbers = #tpu.dot_dimension_numbers<[1], [0], [0], [1], [0, 0, 1, 1], [], []>} : vector<8x32xbf16>, vector<32x32xbf16>, vector<8x32xf32> -> vector<8x32xf32>
    %c0_39 = arith.constant 0 : index
    %c0_40 = arith.constant 0 : index
    %96 = vector.load %arg5[%c0_39, %c0_40] : memref<1x32xf32, #tpu.memory_space<vmem>>, vector<1x32xf32>
    %97 = vector.broadcast %96 : vector<1x32xf32> to vector<8x32xf32>
    %98 = arith.addf %95, %97 : vector<8x32xf32>
    %c0_41 = arith.constant 0 : index
    %c0_42 = arith.constant 0 : index
    %99 = vector.load %arg6[%c0_41, %c0_42] : memref<1x32xf32, #tpu.memory_space<vmem>>, vector<1x32xf32>
    %c0_43 = arith.constant 0 : index
    %c0_44 = arith.constant 0 : index
    %100 = vector.load %arg7[%c0_43, %c0_44] : memref<1x32xf32, #tpu.memory_space<vmem>>, vector<1x32xf32>
    %101 = arith.addf %1, %98 : vector<8x32xf32>
    %cst_45 = arith.constant dense<0.000000e+00> : vector<8xf32>
    %102 = vector.multi_reduction <add>, %101, %cst_45 [1] : vector<8x32xf32> to vector<8xf32>
    %103 = vector.shape_cast %102 : vector<8xf32> to vector<8x1xf32>
    %cst_46 = arith.constant 3.200000e+01 : f32
    %104 = vector.broadcast %cst_46 : f32 to vector<8x1xf32>
    %105 = arith.divf %103, %104 : vector<8x1xf32>
    %106 = vector.broadcast %105 : vector<8x1xf32> to vector<8x32xf32>
    %107 = arith.subf %101, %106 : vector<8x32xf32>
    %108 = arith.mulf %107, %107 : vector<8x32xf32>
    %cst_47 = arith.constant dense<0.000000e+00> : vector<8xf32>
    %109 = vector.multi_reduction <add>, %108, %cst_47 [1] : vector<8x32xf32> to vector<8xf32>
    %110 = vector.shape_cast %109 : vector<8xf32> to vector<8x1xf32>
    %cst_48 = arith.constant 3.200000e+01 : f32
    %111 = vector.broadcast %cst_48 : f32 to vector<8x1xf32>
    %112 = arith.divf %110, %111 : vector<8x1xf32>
    %113 = vector.broadcast %105 : vector<8x1xf32> to vector<8x32xf32>
    %114 = arith.subf %101, %113 : vector<8x32xf32>
    %cst_49 = arith.constant 9.99999996E-13 : f32
    %115 = vector.broadcast %cst_49 : f32 to vector<8x1xf32>
    %116 = arith.addf %112, %115 : vector<8x1xf32>
    %117 = math.rsqrt %116 : vector<8x1xf32>
    %118 = vector.broadcast %117 : vector<8x1xf32> to vector<8x32xf32>
    %119 = arith.mulf %114, %118 : vector<8x32xf32>
    %120 = vector.broadcast %99 : vector<1x32xf32> to vector<8x32xf32>
    %121 = arith.mulf %120, %119 : vector<8x32xf32>
    %122 = vector.broadcast %100 : vector<1x32xf32> to vector<8x32xf32>
    %123 = arith.addf %121, %122 : vector<8x32xf32>
    %124 = arith.truncf %123 : vector<8x32xf32> to vector<8x32xbf16>
    %c0_50 = arith.constant 0 : index
    %c0_51 = arith.constant 0 : index
    %125 = vector.load %arg8[%c0_50, %c0_51] : memref<32x64xbf16, #tpu.memory_space<vmem>>, vector<32x64xbf16>
    %cst_52 = arith.constant dense<0.000000e+00> : vector<8x64xf32>
    %126 = tpu.matmul %124, %125, %cst_52 {dimension_numbers = #tpu.dot_dimension_numbers<[1], [0], [0], [1], [0, 0, 1, 1], [], []>} : vector<8x32xbf16>, vector<32x64xbf16>, vector<8x64xf32> -> vector<8x64xf32>
    %c0_53 = arith.constant 0 : index
    %c0_54 = arith.constant 0 : index
    %127 = vector.load %arg9[%c0_53, %c0_54] : memref<1x64xf32, #tpu.memory_space<vmem>>, vector<1x64xf32>
    %128 = vector.broadcast %127 : vector<1x64xf32> to vector<8x64xf32>
    %129 = arith.addf %126, %128 : vector<8x64xf32>
    %cst_55 = arith.constant 0.000000e+00 : f32
    %130 = vector.broadcast %cst_55 : f32 to vector<8x64xf32>
    %131 = arith.maximumf %129, %130 : vector<8x64xf32>
    %132 = arith.truncf %131 : vector<8x64xf32> to vector<8x64xbf16>
    %c0_56 = arith.constant 0 : index
    %c0_57 = arith.constant 0 : index
    %133 = vector.load %arg10[%c0_56, %c0_57] : memref<64x32xbf16, #tpu.memory_space<vmem>>, vector<64x32xbf16>
    %cst_58 = arith.constant dense<0.000000e+00> : vector<8x32xf32>
    %134 = tpu.matmul %132, %133, %cst_58 {dimension_numbers = #tpu.dot_dimension_numbers<[1], [0], [0], [1], [0, 0, 1, 1], [], []>} : vector<8x64xbf16>, vector<64x32xbf16>, vector<8x32xf32> -> vector<8x32xf32>
    %c0_59 = arith.constant 0 : index
    %c0_60 = arith.constant 0 : index
    %135 = vector.load %arg11[%c0_59, %c0_60] : memref<1x32xf32, #tpu.memory_space<vmem>>, vector<1x32xf32>
    %136 = vector.broadcast %135 : vector<1x32xf32> to vector<8x32xf32>
    %137 = arith.addf %134, %136 : vector<8x32xf32>
    %c0_61 = arith.constant 0 : index
    %c0_62 = arith.constant 0 : index
    %138 = vector.load %arg12[%c0_61, %c0_62] : memref<1x32xf32, #tpu.memory_space<vmem>>, vector<1x32xf32>
    %c0_63 = arith.constant 0 : index
    %c0_64 = arith.constant 0 : index
    %139 = vector.load %arg13[%c0_63, %c0_64] : memref<1x32xf32, #tpu.memory_space<vmem>>, vector<1x32xf32>
    %140 = arith.addf %123, %137 : vector<8x32xf32>
    %cst_65 = arith.constant dense<0.000000e+00> : vector<8xf32>
    %141 = vector.multi_reduction <add>, %140, %cst_65 [1] : vector<8x32xf32> to vector<8xf32>
    %142 = vector.shape_cast %141 : vector<8xf32> to vector<8x1xf32>
    %cst_66 = arith.constant 3.200000e+01 : f32
    %143 = vector.broadcast %cst_66 : f32 to vector<8x1xf32>
    %144 = arith.divf %142, %143 : vector<8x1xf32>
    %145 = vector.broadcast %144 : vector<8x1xf32> to vector<8x32xf32>
    %146 = arith.subf %140, %145 : vector<8x32xf32>
    %147 = arith.mulf %146, %146 : vector<8x32xf32>
    %cst_67 = arith.constant dense<0.000000e+00> : vector<8xf32>
    %148 = vector.multi_reduction <add>, %147, %cst_67 [1] : vector<8x32xf32> to vector<8xf32>
    %149 = vector.shape_cast %148 : vector<8xf32> to vector<8x1xf32>
    %cst_68 = arith.constant 3.200000e+01 : f32
    %150 = vector.broadcast %cst_68 : f32 to vector<8x1xf32>
    %151 = arith.divf %149, %150 : vector<8x1xf32>
    %152 = vector.broadcast %144 : vector<8x1xf32> to vector<8x32xf32>
    %153 = arith.subf %140, %152 : vector<8x32xf32>
    %cst_69 = arith.constant 9.99999996E-13 : f32
    %154 = vector.broadcast %cst_69 : f32 to vector<8x1xf32>
    %155 = arith.addf %151, %154 : vector<8x1xf32>
    %156 = math.rsqrt %155 : vector<8x1xf32>
    %157 = vector.broadcast %156 : vector<8x1xf32> to vector<8x32xf32>
    %158 = arith.mulf %153, %157 : vector<8x32xf32>
    %159 = vector.broadcast %138 : vector<1x32xf32> to vector<8x32xf32>
    %160 = arith.mulf %159, %158 : vector<8x32xf32>
    %161 = vector.broadcast %139 : vector<1x32xf32> to vector<8x32xf32>
    %162 = arith.addf %160, %161 : vector<8x32xf32>
    %c0_70 = arith.constant 0 : index
    %c0_71 = arith.constant 0 : index
    %c0_72 = arith.constant 0 : index
    %163 = vector.load %arg14[%c0_70, %c0_71, %c0_72] : memref<1x8x32xf32, #tpu.memory_space<vmem>>, vector<1x8x32xf32>
    %164 = vector.shape_cast %163 : vector<1x8x32xf32> to vector<8x32xf32>
    %165 = vector.shape_cast %162 : vector<8x32xf32> to vector<1x8x32xf32>
    tpu.vector_store %arg14[%c0_70, %c0_71, %c0_72], %165 {strides = array<i32>} : memref<1x8x32xf32, #tpu.memory_space<vmem>>, vector<1x8x32xf32>,
    return
  }
  func.func @transform_0(%arg0: i32) -> (i32, i32, i32) {
    %c0_i32 = arith.constant 0 : i32
    %c0_i32_0 = arith.constant 0 : i32
    %c0_i32_1 = arith.constant 0 : i32
    return %arg0, %c0_i32, %c0_i32_0 : i32, i32, i32
  }
  func.func @transform_1(%arg0: i32) -> (i32, i32) {
    %c0_i32 = arith.constant 0 : i32
    %c0_i32_0 = arith.constant 0 : i32
    %c0_i32_1 = arith.constant 0 : i32
    return %c0_i32, %c0_i32_0 : i32, i32
  }
  func.func @transform_2(%arg0: i32) -> (i32, i32) {
    %c0_i32 = arith.constant 0 : i32
    %c0_i32_0 = arith.constant 0 : i32
    %c0_i32_1 = arith.constant 0 : i32
    return %c0_i32, %c0_i32_0 : i32, i32
  }
  func.func @transform_3(%arg0: i32) -> (i32, i32) {
    %c0_i32 = arith.constant 0 : i32
    %c0_i32_0 = arith.constant 0 : i32
    %c0_i32_1 = arith.constant 0 : i32
    return %c0_i32, %c0_i32_0 : i32, i32
  }
  func.func @transform_4(%arg0: i32) -> (i32, i32) {
    %c0_i32 = arith.constant 0 : i32
    %c0_i32_0 = arith.constant 0 : i32
    %c0_i32_1 = arith.constant 0 : i32
    return %c0_i32, %c0_i32_0 : i32, i32
  }
  func.func @transform_5(%arg0: i32) -> (i32, i32) {
    %c0_i32 = arith.constant 0 : i32
    %c0_i32_0 = arith.constant 0 : i32
    %c0_i32_1 = arith.constant 0 : i32
    return %c0_i32, %c0_i32_0 : i32, i32
  }
  func.func @transform_6(%arg0: i32) -> (i32, i32) {
    %c0_i32 = arith.constant 0 : i32
    %c0_i32_0 = arith.constant 0 : i32
    %c0_i32_1 = arith.constant 0 : i32
    return %c0_i32, %c0_i32_0 : i32, i32
  }
  func.func @transform_7(%arg0: i32) -> (i32, i32) {
    %c0_i32 = arith.constant 0 : i32
    %c0_i32_0 = arith.constant 0 : i32
    %c0_i32_1 = arith.constant 0 : i32
    return %c0_i32, %c0_i32_0 : i32, i32
  }
  func.func @transform_8(%arg0: i32) -> (i32, i32) {
    %c0_i32 = arith.constant 0 : i32
    %c0_i32_0 = arith.constant 0 : i32
    %c0_i32_1 = arith.constant 0 : i32
    return %c0_i32, %c0_i32_0 : i32, i32
  }
  func.func @transform_9(%arg0: i32) -> (i32, i32) {
    %c0_i32 = arith.constant 0 : i32
    %c0_i32_0 = arith.constant 0 : i32
    %c0_i32_1 = arith.constant 0 : i32
    return %c0_i32, %c0_i32_0 : i32, i32
  }
  func.func @transform_10(%arg0: i32) -> (i32, i32) {
    %c0_i32 = arith.constant 0 : i32
    %c0_i32_0 = arith.constant 0 : i32
    %c0_i32_1 = arith.constant 0 : i32
    return %c0_i32, %c0_i32_0 : i32, i32
  }
  func.func @transform_11(%arg0: i32) -> (i32, i32) {
    %c0_i32 = arith.constant 0 : i32
    %c0_i32_0 = arith.constant 0 : i32
    %c0_i32_1 = arith.constant 0 : i32
    return %c0_i32, %c0_i32_0 : i32, i32
  }
  func.func @transform_12(%arg0: i32) -> (i32, i32) {
    %c0_i32 = arith.constant 0 : i32
    %c0_i32_0 = arith.constant 0 : i32
    %c0_i32_1 = arith.constant 0 : i32
    return %c0_i32, %c0_i32_0 : i32, i32
  }
  func.func @transform_13(%arg0: i32) -> (i32, i32, i32) {
    %c0_i32 = arith.constant 0 : i32
    %c0_i32_0 = arith.constant 0 : i32
    %c0_i32_1 = arith.constant 0 : i32
    return %arg0, %c0_i32, %c0_i32_0 : i32, i32, i32
  }
  func.func @transform_14(%arg0: i32) -> (i32, i32, i32, i32) {
    %c0_i32 = arith.constant 0 : i32
    %c0_i32_0 = arith.constant 0 : i32
    %c0_i32_1 = arith.constant 0 : i32
    %c0_i32_2 = arith.constant 0 : i32
    return %arg0, %c0_i32, %c0_i32_0, %c0_i32_1 : i32, i32, i32, i32
  }
}

</mosaic_0001>

<bundles_post_ra>
// kernel: tpu_custom_call.1
= control target key start
LH: loop header
LB: loop body
LE: loop exit
PB: predicated region body
PF: predicated region fallthrough
CT: control target
= control target key end

     0   :  { %s1772_s0 = inlined_call_operand.vmem [shape: f32[2,8,32], index: 0, kind: input, shape index: {}]   ;;  %s1773_s1 = inlined_call_operand.vmem [shape: bf16[32,96], index: 1, kind: input, shape index: {}]   ;;  %s1774_s2 = inlined_call_operand.vmem [shape: f32[1,96], index: 2, kind: input, shape index: {}]   ;;  %s1775_s3 = inlined_call_operand.vmem [shape: bf16[32,32], index: 3, kind: input, shape index: {}]   ;;  %s1776_s4 = inlined_call_operand.vmem [shape: f32[1,32], index: 4, kind: input, shape index: {}]   ;;  %s1777_s5 = inlined_call_operand.vmem [shape: f32[1,32], index: 5, kind: input, shape index: {}]   ;;  %s1778_s6 = inlined_call_operand.vmem [shape: f32[1,32], index: 6, kind: input, shape index: {}]   ;;  %s1779_s7 = inlined_call_operand.hbm [shape: bf16[32,64], index: 7, kind: input, shape index: {}]   ;;  %s1780_s8 = inlined_call_operand.vmem [shape: f32[1,64], index: 8, kind: input, shape index: {}]   ;;  %s1781_s9 = inlined_call_operand.vmem [shape: bf16[64,32], index: 9, kind: input, shape index: {}]   ;;  %s1782_s10 = inlined_call_operand.vmem [shape: f32[1,32], index: 10, kind: input, shape index: {}]   ;;  %s1783_s11 = inlined_call_operand.vmem [shape: f32[1,32], index: 11, kind: input, shape index: {}]   ;;  %s1784_s12 = inlined_call_operand.vmem [shape: f32[1,32], index: 12, kind: input, shape index: {}]   ;;  %s1785_s13 = inlined_call_operand.hbm [shape: f32[2,8,32], index: 13, kind: output, shape index: {0}]   ;;  %s1786_s14 = inlined_call_operand.hbm [shape: f32[2,4,8,8], index: 14, kind: output, shape index: {1}]  }
   0x1   :  { %1791 = sst [smem:[#allocation14_spill]] %s1772_s0 }
   0x2   :  { %1792 = sst [smem:[#allocation15_spill]] %s1773_s1 }
   0x3   :  { %1793 = sst [smem:[#allocation16_spill]] %s1774_s2 }
   0x4   :  { %1794 = sst [smem:[#allocation17_spill]] %s1775_s3 }
   0x5   :  { %1795 = sst [smem:[#allocation18_spill]] %s1779_s7 }
   0x6   :  { %20 = vsyncpa [#allocation3], 0 }
   0x7   :  { %21 = vsyncpa [#allocation4], 0 }
   0x8   :  { %23 = vsyncpa [#allocation4 + $0x1], 0 }
   0x9   :  { %24 = vsyncpa [#allocation7], 0 }
   0xa   :  { %26 = vsyncpa [#allocation7 + $0x1], 0  ;;  %s1542_s29 = smov 0   ;;  %s1544_s30 = smov 0  }
   0xb   :  { %s1546_s15 = smov 0   ;;  %s1548_s16 = smov 0  }
   0xc LB: > { %1796 = sst [smem:[#allocation11_spill]] %s1442_s15  ;;  %s1563_s17 = sadd.s32 4294967295, %s1446_s16   ;;  %s1446_s16 = sphi %s1548_s16, %s1807_s16   ;;  %s1442_s15 = sphi %s1546_s15, %s1809_s15   ;;  %s1438_s30 = sphi %s1544_s30, %s1811_s30   ;;  %s1434_s29 = sphi %s1542_s29, %s1810_s29  }
   0xd   : > { %s1133_s18 = sadd.s32 4294967294, %s1446_s16   ;;  %s1567_s19 = sadd.s32 1, %s1446_s16  }
   0xe   : > { %1797 = sst [smem:[#allocation12_spill]] %s1567_s19  ;;  %s317_s20 = sadd.s32 1, %s1442_s15 }
   0xf   : > { %s314_s21 = ssub.s32 %s1446_s16, %s1567_s19  ;;  %p327_p0 = scmp.ne.s32.totalorder %s1442_s15, %s1438_s30 }
  0x10   : > { %p315_p1 = scmp.eq.s32.totalorder %s314_s21, 0  ;;  %p328_p2 = scmp.eq.s32.totalorder %s1563_s17, 1 }
  0x11   : > { %p333_p3 = scmp.ne.s32.totalorder %s1438_s30, %s1434_s29  ;;  %p334_p4 = scmp.eq.s32.totalorder %s1133_s18, 1 }
  0x12   : > { %s1578_s22 = scalar_select %p315_p1, %s1442_s15, %s317_s20  }
  0x13   : > { %p1580_p5 = por %p328_p2, %p327_p0  ;;  %p1584_p6 = por %p334_p4, %p333_p3 }
  0x14   : > { %1798 = sst [smem:[#allocation13_spill]] %s1578_s22  ;;  %p1134_p7 = scmp.ge.s32.totalorder %s1446_s16, 1 }
  0x15   : > { %p367_p8 = scmp.lt.s32.totalorder %s1446_s16, 3  ;;  %p1234_p9 = scmp.eq.s32.totalorder %s1563_s17, 0 }
  0x16   : > { %s1801_s7 = sld [smem:[#allocation18_spill]]  ;;  %s1448_s28 = smov [#allocation2]  }
  0x17   : > { %p368_p10 = pnand %p1134_p7, %p367_p8  ;;  %s398_s18 = sshll.u32 %s1448_s28, 4  ;;  %s399_s18 = int_to_ptr.vmem [resolvable:$true] %s398_s18 }
  0x18   : > { %s1449_s20 = smov 64   ;;  %s1450_s21 = smov 4  }
  0x19   : > { %p1223_p11 = pneg %p368_p10  ;;  %436 = sbr.rel (%p368_p10) target bundleno = 1920 (0x780), region = 72 }
  0x1b   : > { %p1224_p12 = pnand %p1234_p9, %p1223_p11 }
  0x1c   : > { %s396_s27 = sshll.u32 %s1801_s7, 4  ;;  %s397_s27 = int_to_ptr.hbm [resolvable:$true] %s396_s27 }
  0x1d   : > { %1226 = dma.hbm_to_vmem [thread:$0]  (!%p1224_p12), %s397_s27, 256, %s399_s18, [#allocation3], %s1449_s20, %s1449_s20, %s1450_s21  }
  0x1e   : > { %1421 = dma.done.wait (%p1234_p9), [#allocation3], 256  }
  0x1f   : > { %1423 = vsyncadd (%p1234_p9), [#allocation3], 4294967040  ;;  %p487_p13 = scmp.lt.s32.totalorder %s1563_s17, 1  ;;  %s1802_s0 = sld [smem:[#allocation14_spill]]  ;;  %vm514_vm0 = vcmask 261120   ;;  %vm539_vm1 = vcmask 64512  }
  0x20   : > { %s1803_s1 = sld [smem:[#allocation15_spill]]  ;;  %s1451_s15 = smov 96   ;;  %vm577_vm2 = vcmask 1043456   ;;  %vm784_vm3 = vcmask 130048   ;;  %vm786_vm4 = vcmask 195584   ;;  %vm940_vm9 = vcmask 523264  }
  0x21   : > { %s488_s25 = scalar_select %p487_p13, %s1563_s17, 1 }
  0x22   : > { %s1804_s2 = sld [smem:[#allocation16_spill]]  ;;  %s1452_s19 = smov 104  }
  0x23   : > { %s1141_s26 = sshll.u32 %s488_s25, 3  ;;  %s1454_s21 = smov 88  }
  0x24   : > { %s1455_s25 = smov 80   ;;  %s1457_s28 = smov 112  }
  0x25   : > { %s490_s22 = scalar_lea.vmem %s1802_s0, %s1141_s26  ;;  %s1456_s26 = smov 72  }
  0x26   : > { %v1205_v0 = vld [vmem:[%s1803_s1 + $0x8] sm:$0xff]  ;;  %v1204_v1 = vld [vmem:[%s1803_s1] sm:$0xff]  ;;  %s1458_s27 = smov 64   ;;  %s1459_s18 = smov 40  }
  0x27   : > { %v1611_v2 = vld [vmem:[%s490_s22] sm:$0xff]  ;;  %524 = vmatpush.bf16.msra.mxu0 %v1205_v0  ;;  %s1453_s22 = smov 120   ;;  %s1460_s7 = smov 56  }
  0x28   : > { %v493_v3 = vpack.c.bf16 %v1611_v2, %v1611_v2  ;;  %v1288_v4 = vld [vmem:[%s1804_s2] ss:$0 sm:$0xff]  ;;  %s1461_s20 = smov 48   ;;  %s1805_s3 = sld [smem:[#allocation17_spill]] }
  0x29   : > { %s1368_s2 = scalar_lea.hbm %s1786_s14, 64 }
  0x2b   : > { %525 = vmatpush.bf16.msra.mxu0 %v1204_v1 }
  0x2e   : > { %1150 = vmatmul.msk.bf16.vlgmr.msra.gmra.mxu0 %vm514_vm0, %v493_v3 }
  0xab   : > { %v527_v5 = vpop.f32.mrf.mxu0 }
  0xac   : > { %v528_v6 = vadd.f32 %v1288_v4, %v527_v5 }
  0xae   : > { %v531_v7 = vmul.f32 0.35355338, %v528_v6  ;;  %v533_v8 = vpack.c.bf16 %v528_v6, %v528_v6 }
  0xb0   : > { %v532_v9 = vpack.c.bf16 %v531_v7, %v531_v7  ;;  %v535_v10 = vunpack.c.l.b16 %v533_v8 }
  0xb2   : > { %v1619_v11 = vpack.c.b16 %v535_v10, %v535_v10  ;;  %v595_v12 = vunpack.c.l.b16 %v532_v9 }
  0xb3   : > { %v529_v13 = vpop.f32.mrf.mxu0 }
  0xb4   : > { %537 = vrot.lane.b32.xlu0 %v1619_v11, %s1451_s15  ;;  %v596_v14 = vpack.c.b16 %v595_v12, %v595_v12  ;;  %s1647_s15 = sand.u32 1, %s1438_s30  }
  0xb6   : > { %713 = vrot.lane.b32.xlu2 %v596_v14, %s1452_s19  ;;  %597 = vrot.lane.b32.xlu1 %v596_v14, %s1453_s22  ;;  %s1140_s19 = sshll.u32 %s1647_s15, 5 }
  0xb7   : > { %s1650_s22 = scalar_lea.vmem [#allocation6], %s1140_s19 }
  0xbc   : > { %599 = vrot.lane.b32.xlu0 %v1619_v11, %s1454_s21  ;;  %s1790_s21 = smov 8  }
  0xbe   : > { %657 = vrot.lane.b32.xlu2 %v1619_v11, %s1455_s25  ;;  %715 = vrot.lane.b32.xlu1 %v1619_v11, %s1456_s26  ;;  %s1463_s25 = smov 16   ;;  %s1464_s26 = smov 24  }
  0xc4   : > { %655 = vrot.lane.b32.xlu0 %v596_v14, %s1457_s28 }
 0x110   : > { %v714_v15 = vpop.permute.xlu2 %713 }
 0x118   : > { %v658_v16 = vpop.permute.xlu2 %657 }
 0x119   : > { %v663_v17 = vsel %vm539_vm1, %v658_v16, 0 }
 0x11a   : > { %672 = vmatpush.bf16.xpose.msrb.mxu0 %v663_v17 }
 0x126   : > { %v538_v18 = vpop.permute.xlu0 %537 }
 0x127   : > { %v544_v19 = vsel %vm539_vm1, %v538_v18, 0 }
 0x128   : > { %553 = vmatpush.bf16.xpose.msra.mxu1 %v544_v19  ;;  %v598_v20 = vpop.permute.xlu1 %597 }
 0x12e   : > { %v600_v21 = vpop.permute.xlu0 %599 }
 0x12f   : > { %1151 = vmatmul.msk.bf16.vlgmr.msra.gmra.mxu1 %vm539_vm1, %v532_v9  ;;  %v605_v22 = vsel %vm539_vm1, %v600_v21, 0 }
 0x130   : > { %614 = vmatpush.bf16.xpose.msra.mxu3 %v605_v22  ;;  %v716_v23 = vpop.permute.xlu1 %715 }
 0x131   : > { %v721_v24 = vsel %vm539_vm1, %v716_v23, 0 }
 0x136   : > { %v656_v25 = vpop.permute.xlu0 %655 }
 0x137   : > { %1153 = vmatmul.msk.bf16.vlgmr.msra.gmra.mxu3 %vm539_vm1, %v598_v20  ;;  %1156 = vmatmul.msk.bf16.vlgmr.msrb.gmra.mxu0 %vm539_vm1, %v656_v25 }
 0x138   : > { %730 = vmatpush.bf16.xpose.msrb.mxu3 %v721_v24 }
 0x147   : > { %1159 = vmatmul.msk.bf16.vlgmr.msrb.gmra.mxu3 %vm539_vm1, %v714_v15 }
 0x1ac   : > { %v555_v26 = vpop.f32.mrf.mxu1 }
 0x1ad   : > { %v559_v27 = vsel %vm539_vm1, %v555_v26, -inf }
 0x1ae   : > { %560 = vmax.xlane.f32.xlu1 %v559_v27  ;;  %v1207_v27 = vld [vmem:[%s1805_s3 + $0x8] sm:$0xff] }
 0x1af   : > { %818 = vmatpush.bf16.msra.mxu0 %v1207_v27 }
 0x1b4   : > { %v557_v28 = vpop.f32.mrf.mxu1  ;;  %v674_v29 = vpop.f32.mrf.mxu0 }
 0x1b5   : > { %v678_v34 = vsel %vm539_vm1, %v674_v29, -inf  ;;  %v1206_v28 = vld [vmem:[%s1805_s3] sm:$0xff] }
 0x1b6   : > { %819 = vmatpush.bf16.msra.mxu0 %v1206_v28 }
 0x1ba   : > { %v616_v30 = vpop.f32.mrf.mxu3 }
 0x1bb   : > { %v620_v31 = vsel %vm539_vm1, %v616_v30, -inf }
 0x1bc   : > { %v676_v32 = vpop.f32.mrf.mxu0  ;;  %621 = vmax.xlane.f32.xlu2 %v620_v31 }
 0x1c2   : > { %v618_v33 = vpop.f32.mrf.mxu3 }
 0x1c4   : > { %679 = vmax.xlane.f32.xlu2 %v678_v34 }
 0x1ca   : > { %v732_v35 = vpop.f32.mrf.mxu3 }
 0x1cb   : > { %v736_v36 = vsel %vm539_vm1, %v732_v35, -inf }
 0x1cc   : > { %737 = vmax.xlane.f32.xlu0 %v736_v36  ;;  %v1289_v36 = vld [vmem:[%s1776_s4] ss:$0 sm:$0xff] }
 0x1d2   : > { %v734_v37 = vpop.f32.mrf.mxu3 }
 0x1dc   : > { %572 = vrot.lane.b32.xlu2 %v1619_v11, %s1458_s27 }
 0x1e4   : > { %750 = vrot.lane.b32.xlu2 %v1619_v11, %s1459_s18 }
 0x221   : > { %v561_v38 = vpop.xlane.xlu1 %560 }
 0x222   : > { %v562_v39 = vsub.f32 %v555_v26, %v561_v38 }
 0x224   : > { %v563_v40 = vmul.f32 1.442695, %v562_v39 }
 0x226   : > { %1296 = vpow2.f32 %v563_v40 }
 0x22c   : > { %v1297_v41 = vpop.eup %1296 }
 0x22d   : > { %v565_v42 = vsel %vm539_vm1, %v1297_v41, 0.0 }
 0x22e   : > { %566 = vadd.xlane.f32.xlu1 %v565_v42  ;;  %v1465_v42 = vmov 32.0  }
 0x22f   : > { %v622_v43 = vpop.xlane.xlu2 %621 }
 0x230   : > { %v623_v46 = vsub.f32 %v616_v30, %v622_v43 }
 0x232   : > { %v624_v48 = vmul.f32 1.442695, %v623_v46 }
 0x237   : > { %v680_v44 = vpop.xlane.xlu2 %679 }
 0x238   : > { %v681_v45 = vsub.f32 %v674_v29, %v680_v44 }
 0x23a   : > { %v682_v47 = vmul.f32 1.442695, %v681_v45 }
 0x23c   : > { %1298 = vpow2.f32 %v682_v47 }
 0x23d   : > { %1300 = vpow2.f32 %v624_v48 }
 0x23f   : > { %v573_v49 = vpop.permute.xlu2 %572  ;;  %v738_v50 = vpop.xlane.xlu0 %737 }
 0x240   : > { %v579_v51 = vsel %vm577_vm2, %v573_v49, 0  ;;  %v739_v53 = vsub.f32 %v732_v35, %v738_v50 }
 0x241   : > { %588 = vmatpush.bf16.msra.mxu2 %v579_v51 }
 0x242   : > { %v1299_v52 = vpop.eup %1298  ;;  %v740_v55 = vmul.f32 1.442695, %v739_v53  ;;  %v1209_v53 = vld [vmem:[#allocation2 + $0x8] sm:$0xff] }
 0x243   : > { %v684_v54 = vsel %vm539_vm1, %v1299_v52, 0.0  ;;  %v1301_v56 = vpop.eup %1300 }
 0x244   : > { %685 = vadd.xlane.f32.xlu0 %v684_v54  ;;  %1302 = vpow2.f32 %v740_v55  ;;  %v626_v57 = vsel %vm539_vm1, %v1301_v56, 0.0  ;;  %v1208_v54 = vld [vmem:[#allocation2] sm:$0xff]  ;;  %v1213_v55 = vld [vmem:[%s1781_s9 + $0x18] sm:$0xff] }
 0x245   : > { %948 = vmatpush.bf16.msra.mxu3 %v1213_v55 }
 0x247   : > { %634 = vrot.lane.b32.xlu1 %v1619_v11, %s1460_s7  ;;  %v751_v1 = vpop.permute.xlu2 %750 }
 0x248   : > { %v756_v5 = vsel %vm577_vm2, %v751_v1, 0 }
 0x24a   : > { %v1303_v58 = vpop.eup %1302 }
 0x24b   : > { %v742_v59 = vsel %vm539_vm1, %v1303_v58, 0.0 }
 0x24c   : > { %627 = vadd.xlane.f32.xlu0 %v626_v57 }
 0x254   : > { %743 = vadd.xlane.f32.xlu0 %v742_v59 }
 0x268   : > { %692 = vrot.lane.b32.xlu0 %v1619_v11, %s1461_s20  ;;  %s997_s20 = scalar_lea.sflag [#allocation7], %s1647_s15 }
 0x2a1   : > { %v567_v60 = vpop.xlane.xlu1 %566 }
 0x2a2   : > { %1304 = vrcp.f32 %v567_v60  ;;  %v1211_v60 = vld [vmem:[%s1781_s9 + $0x8] sm:$0xff] }
 0x2a8   : > { %v1305_v61 = vpop.eup %1304 }
 0x2a9   : > { %v569_v62 = vmul.f32 %v1305_v61, %v1297_v41 }
 0x2ab   : > { %v571_v63 = vpack.c.bf16 %v569_v62, %v569_v62  ;;  %570 = vst.msk [vmem:[%s1650_s22] sm:$0xff] %vm539_vm1, %v569_v62 }
 0x2ad   : > { %1152 = vmatmul.msk.bf16.vlgmr.msra.gmra.mxu2 %vm539_vm1, %v571_v63 }
 0x2b7   : > { %v686_v0 = vpop.xlane.xlu0 %685 }
 0x2b8   : > { %1306 = vrcp.f32 %v686_v0 }
 0x2b9   : > { %v635_v3 = vpop.permute.xlu1 %634 }
 0x2ba   : > { %v640_v4 = vsel %vm577_vm2, %v635_v3, 0 }
 0x2bb   : > { %649 = vmatpush.bf16.msrb.mxu2 %v640_v4  ;;  %v1290_v4 = vld [vmem:[%s1777_s5] ss:$0 sm:$0xff] }
 0x2be   : > { %v1307_v6 = vpop.eup %1306 }
 0x2bf   : > { %765 = vmatpush.bf16.msra.mxu2 %v756_v5  ;;  %v688_v7 = vmul.f32 %v1307_v6, %v1299_v52  ;;  %v628_v8 = vpop.xlane.xlu0 %627  ;;  %v1291_v6 = vld [vmem:[%s1778_s6] ss:$0 sm:$0xff] }
 0x2c0   : > { %1308 = vrcp.f32 %v628_v8 }
 0x2c1   : > { %1157 = vst.msk [vmem:[%s1650_s22 + $0x10] sm:$0xff] %vm539_vm1, %v688_v7  ;;  %v691_v18 = vpack.c.bf16 %v688_v7, %v688_v7 }
 0x2c6   : > { %v1309_v9 = vpop.eup %1308 }
 0x2c7   : > { %v630_v10 = vmul.f32 %v1309_v9, %v1301_v56  ;;  %v744_v11 = vpop.xlane.xlu0 %743 }
 0x2c8   : > { %1310 = vrcp.f32 %v744_v11  ;;  %v1210_v11 = vld [vmem:[%s1781_s9] sm:$0xff] }
 0x2c9   : > { %v633_v12 = vpack.c.bf16 %v630_v10, %v630_v10  ;;  %1154 = vst.msk [vmem:[%s1650_s22 + $0x8] sm:$0xff] %vm539_vm1, %v630_v10  ;;  %1312 = vrcp.f32 %v1465_v42 }
 0x2cb   : > { %1155 = vmatmul.msk.bf16.vlgmr.msrb.gmra.mxu2 %vm539_vm1, %v633_v12  ;;  %v1292_v12 = vld [vmem:[%s1780_s8] ss:$0 sm:$0xff] }
 0x2ce   : > { %v1311_v13 = vpop.eup %1310 }
 0x2cf   : > { %v746_v14 = vmul.f32 %v1311_v13, %v1303_v58  ;;  %v1313_v43 = vpop.eup %1312  ;;  %v1212_v58 = vld [vmem:[%s1781_s9 + $0x10] sm:$0xff] }
 0x2d0   : > { %v832_v44 = vmul.f32 32.0, %v1313_v43  ;;  %vm836_vm5 = vweird.f32 %v1313_v43  ;;  %949 = vmatpush.bf16.msra.mxu3 %v1212_v58 }
 0x2d1   : > { %1160 = vst.msk [vmem:[%s1650_s22 + $0x18] sm:$0xff] %vm539_vm1, %v746_v14  ;;  %v749_v15 = vpack.c.bf16 %v746_v14, %v746_v14 }
 0x2d2   : > { %v833_v45 = vsub.f32 1.0, %v832_v44 }
 0x2d4   : > { %v834_v46 = vmul.f32 %v1313_v43, %v833_v45  ;;  %950 = vmatpush.bf16.msra.mxu3 %v1211_v60 }
 0x2d6   : > { %v835_v47 = vadd.f32 %v1313_v43, %v834_v46 }
 0x2d8   : > { %v1681_v48 = vsel %vm836_vm5, %v1313_v43, %v835_v47  ;;  %951 = vmatpush.bf16.msra.mxu3 %v1210_v11 }
 0x2da   : > { %v693_v16 = vpop.permute.xlu0 %692 }
 0x2db   : > { %1161 = vmatmul.msk.bf16.vlgmr.msra.gmra.mxu2 %vm539_vm1, %v749_v15  ;;  %v698_v17 = vsel %vm577_vm2, %v693_v16, 0 }
 0x2dc   : > { %707 = vmatpush.bf16.msrb.mxu1 %v698_v17 }
 0x2df   : > { %1158 = vmatmul.msk.bf16.vlgmr.msrb.gmra.mxu1 %vm539_vm1, %v691_v18  ;;  %v1293_v18 = vld [vmem:[%s1782_s10] ss:$0 sm:$0xff] }
 0x2e0   : > { %895 = vmatpush.bf16.msra.mxu1 %v1209_v53 }
 0x2e4   : > { %896 = vmatpush.bf16.msra.mxu1 %v1208_v54 }
 0x330   : > { %v590_v19 = vpop.f32.mrf.mxu2 }
 0x338   : > { %v592_v20 = vpop.f32.mrf.mxu2 }
 0x34e   : > { %v651_v21 = vpop.f32.mrf.mxu2 }
 0x34f   : > { %772 = vrot.lane.b32.xlu1 %v651_v21, %s1790_s21 }
 0x356   : > { %v653_v22 = vpop.f32.mrf.mxu2 }
 0x35c   : > { %v709_v23 = vpop.f32.mrf.mxu1 }
 0x35d   : > { %776 = vrot.lane.b32.xlu2 %v709_v23, %s1463_s25  ;;  %s1214_s25 = sshll.u32 %s1563_s17, 5 }
 0x35e   : > { %v767_v24 = vpop.f32.mrf.mxu2  ;;  %s1022_s18 = scalar_lea.hbm %s1786_s14, %s1214_s25 }
 0x35f   : > { %780 = vrot.lane.b32.xlu1 %v767_v24, %s1464_s26  ;;  %s1023_s26 = sshll.u32 %s1650_s22, 4  ;;  %s1025_s7 = sshll.u32 %s1022_s18, 4  ;;  %s1024_s26 = int_to_ptr.vmem [resolvable:$true] %s1023_s26  ;;  %s1026_s7 = int_to_ptr.hbm [resolvable:$true] %s1025_s7 }
 0x360   : > { %s1362_s19 = sshra.s32 %s1026_s7, 4  ;;  %s1363_s19 = int_to_ptr.hbm [resolvable:$true] %s1362_s19 }
 0x361   : > { %s1364_s21 = scalar_lea.hbm %s1363_s19, 32  ;;  %p1369_p3 = scmp.lt.s32.totalorder %s1363_s19, %s1786_s14 }
 0x362   : > { %p1365_p0 = scmp.ne.s32.totalorder %s1363_s19, %s1364_s21  ;;  %p1370_p4 = scmp.lt.s32.totalorder %s1368_s2, %s1364_s21 }
 0x364   : > { %v711_v25 = vpop.f32.mrf.mxu1  ;;  %p1366_p1 = pnand %p1365_p0, %p1580_p5  ;;  %p1371_p7 = por %p1370_p4, %p1369_p3 }
 0x366   : > { %v769_v26 = vpop.f32.mrf.mxu2  ;;  %p1367_p2 = pneg %p1366_p1 }
 0x368   : > { %p1372_p8 = pnand %p1371_p7, %p1367_p2 }
 0x3b7   : > { %v777_v31 = vpop.permute.xlu2 %776 }
 0x3c1   : > { %v773_v29 = vpop.permute.xlu1 %772 }
 0x3c2   : > { %v783_v30 = vsel %vm539_vm1, %v590_v19, %v773_v29 }
 0x3c3   : > { %v785_v33 = vsel %vm784_vm3, %v783_v30, %v777_v31 }
 0x3d1   : > { %v781_v32 = vpop.permute.xlu1 %780 }
 0x3d2   : > { %v787_v34 = vsel %vm786_vm4, %v785_v33, %v781_v32 }
 0x3d3   : > { %v788_v35 = vpack.c.bf16 %v787_v34, %v787_v34 }
 0x3d5   : > { %1170 = vmatmul.msk.bf16.vlgmr.msra.gmra.mxu0 %vm514_vm0, %v788_v35 }
 0x452   : > { %v821_v37 = vpop.f32.mrf.mxu0 }
 0x453   : > { %v822_v38 = vadd.f32 %v1289_v36, %v821_v37 }
 0x455   : > { %v827_v39 = vadd.f32 %v822_v38, %v1611_v2 }
 0x457   : > { %v828_v40 = vsel %vm514_vm0, %v827_v39, 0.0 }
 0x458   : > { %829 = vadd.xlane.f32.xlu2 %v828_v40 }
 0x45a   : > { %v823_v41 = vpop.f32.mrf.mxu0 }
 0x4cb   : > { %v830_v49 = vpop.xlane.xlu2 %829 }
 0x4cc   : > { %v838_v50 = vmul.f32 %v1681_v48, %v830_v49 }
 0x4ce   : > { %v839_v51 = vsub.f32 %v827_v39, %v838_v50 }
 0x4d0   : > { %v840_v52 = vmul.f32 %v839_v51, %v839_v51 }
 0x4d2   : > { %v841_v2 = vsel %vm514_vm0, %v840_v52, 0.0 }
 0x4d3   : > { %842 = vadd.xlane.f32.xlu1 %v841_v2 }
 0x546   : > { %v843_v56 = vpop.xlane.xlu1 %842 }
 0x547   : > { %v844_v57 = vmul.f32 %v843_v56, %v1681_v48 }
 0x549   : > { %v845_v59 = vadd.f32 1e-12, %v844_v57 }
 0x54b   : > { %1314 = vrsqrt.f32 %v845_v59  ;;  %vm852_vm7 = vweird.f32 %v845_v59 }
 0x551   : > { %v1315_v61 = vpop.eup %1314 }
 0x552   : > { %v847_v62 = vmul.f32 %v1315_v61, %v845_v59  ;;  %vm853_vm6 = vweird.f32 %v1315_v61 }
 0x553   : > { %vm854_vm8 = vmor %vm852_vm7, %vm853_vm6 }
 0x554   : > { %v848_v63 = vmul.f32 %v1315_v61, %v847_v62 }
 0x556   : > { %v849_v0 = vmul.f32 0.5, %v848_v63 }
 0x558   : > { %v850_v1 = vsub.f32 1.5, %v849_v0 }
 0x55a   : > { %v851_v3 = vmul.f32 %v1315_v61, %v850_v1 }
 0x55c   : > { %v855_v5 = vsel %vm854_vm8, %v1315_v61, %v851_v3 }
 0x55d   : > { %v856_v7 = vmul.f32 %v855_v5, %v839_v51 }
 0x55f   : > { %v860_v8 = vmul.f32 %v1290_v4, %v856_v7 }
 0x561   : > { %v864_v9 = vadd.f32 %v1291_v6, %v860_v8 }
 0x563   : > { %v865_v10 = vpack.c.bf16 %v864_v9, %v864_v9 }
 0x565   : > { %1179 = vmatmul.msk.bf16.vlgmr.msra.gmra.mxu1 %vm514_vm0, %v865_v10 }
 0x5e2   : > { %v898_v13 = vpop.f32.mrf.mxu1 }
 0x5e3   : > { %v899_v14 = vadd.f32 %v1292_v12, %v898_v13 }
 0x5e5   : > { %v902_v15 = vmax.f32 %v899_v14, 0.0 }
 0x5e7   : > { %v903_v16 = vpack.c.bf16 %v902_v15, %v902_v15 }
 0x5e9   : > { %1196 = vmatmul.msk.bf16.vlgmr.msra.gmra.mxu3 %vm940_vm9, %v903_v16 }
 0x5ea   : > { %v900_v17 = vpop.f32.mrf.mxu1 }
 0x66c   : > { %v953_v19 = vpop.f32.mrf.mxu3 }
 0x66d   : > { %v954_v20 = vadd.f32 %v1293_v18, %v953_v19 }
 0x66f   : > { %v959_v21 = vadd.f32 %v954_v20, %v864_v9 }
 0x671   : > { %v960_v22 = vsel %vm514_vm0, %v959_v21, 0.0 }
 0x672   : > { %961 = vadd.xlane.f32.xlu0 %v960_v22 }
 0x674   : > { %v955_v23 = vpop.f32.mrf.mxu3 }
 0x6e5   : > { %v962_v24 = vpop.xlane.xlu0 %961 }
 0x6e6   : > { %v963_v25 = vmul.f32 %v962_v24, %v1681_v48 }
 0x6e8   : > { %v964_v26 = vsub.f32 %v959_v21, %v963_v25 }
 0x6ea   : > { %v965_v27 = vmul.f32 %v964_v26, %v964_v26 }
 0x6ec   : > { %v966_v28 = vsel %vm514_vm0, %v965_v27, 0.0 }
 0x6ed   : > { %967 = vadd.xlane.f32.xlu2 %v966_v28 }
 0x6ee   : > { %1375 = shalt.err (!%p1372_p8)
}
 0x6ef   : > { %s1466_s25 = smov 128   ;;  %s1806_s28 = smov 8   ;;  %v1294_v38 = vld [vmem:[%s1783_s11] ss:$0 sm:$0xff] }
 0x6f0   : > { %1220 = dma.vmem_to_hbm [thread:$0]  (%p1580_p5), %s1024_s26, 512, %s1026_s7, %s997_s20, %s1466_s25, %s1466_s25, %s1806_s28  }
 0x6f1   : > { %s1139_s0 = sshll.u32 %s1647_s15, 3  ;;  %s1199_s1 = sshll.u32 %s1563_s17, 3  ;;  %v1295_v41 = vld [vmem:[%s1784_s12] ss:$0 sm:$0xff] }
 0x6f2   : > { %s1007_s27 = scalar_lea.hbm %s1785_s13, %s1199_s1  ;;  %s479_s17 = scalar_lea.vmem [#allocation5], %s1139_s0 }
 0x6f3   : > { %s1009_s20 = sshll.u32 %s479_s17, 4  ;;  %s1011_s19 = sshll.u32 %s1007_s27, 4  ;;  %s1010_s20 = int_to_ptr.vmem [resolvable:$true] %s1009_s20  ;;  %s1012_s19 = int_to_ptr.hbm [resolvable:$true] %s1011_s19 }
 0x6f4   : > { %s992_s22 = scalar_lea.sflag [#allocation4], %s1647_s15  ;;  %s1390_s25 = sshra.s32 %s1012_s19, 4  ;;  %s1391_s25 = int_to_ptr.hbm [resolvable:$true] %s1390_s25 }
 0x6f5   : > { %s1392_s28 = scalar_lea.hbm %s1391_s25, 8  ;;  %s1396_s0 = scalar_lea.hbm %s1785_s13, 16 }
 0x6f6   : > { %p1393_p9 = scmp.ne.s32.totalorder %s1391_s25, %s1392_s28  ;;  %p1397_p12 = scmp.lt.s32.totalorder %s1391_s25, %s1785_s13 }
 0x6f7   : > { %p1398_p13 = scmp.lt.s32.totalorder %s1396_s0, %s1392_s28 }
 0x6f8   : > { %p1394_p10 = pnand %p1393_p9, %p1580_p5 }
 0x6f9   : > { %p1399_p0 = por %p1398_p13, %p1397_p12 }
 0x6fa   : > { %p1395_p11 = pneg %p1394_p10 }
 0x6fc   : > { %p1400_p1 = pnand %p1399_p0, %p1395_p11 }
 0x760   : > { %v968_v29 = vpop.xlane.xlu2 %967 }
 0x761   : > { %v969_v30 = vmul.f32 %v968_v29, %v1681_v48 }
 0x763   : > { %v970_v31 = vadd.f32 1e-12, %v969_v30 }
 0x765   : > { %1316 = vrsqrt.f32 %v970_v31  ;;  %vm977_vm11 = vweird.f32 %v970_v31 }
 0x76b   : > { %v1317_v32 = vpop.eup %1316 }
 0x76c   : > { %v972_v33 = vmul.f32 %v1317_v32, %v970_v31  ;;  %vm978_vm10 = vweird.f32 %v1317_v32 }
 0x76d   : > { %vm979_vm12 = vmor %vm977_vm11, %vm978_vm10 }
 0x76e   : > { %v973_v34 = vmul.f32 %v1317_v32, %v972_v33 }
 0x770   : > { %v974_v35 = vmul.f32 0.5, %v973_v34 }
 0x772   : > { %v975_v36 = vsub.f32 1.5, %v974_v35 }
 0x774   : > { %v976_v37 = vmul.f32 %v1317_v32, %v975_v36 }
 0x776   : > { %v980_v39 = vsel %vm979_vm12, %v1317_v32, %v976_v37 }
 0x777   : > { %v981_v40 = vmul.f32 %v980_v39, %v964_v26 }
 0x779   : > { %v985_v42 = vmul.f32 %v1294_v38, %v981_v40 }
 0x77b   : > { %v989_v43 = vadd.f32 %v1295_v41, %v985_v42 }
 0x77d   : > { %990 = vst.msk [vmem:[%s479_s17] sm:$0xff] %vm514_vm0, %v989_v43 }
 0x77e   : > { %1403 = shalt.err (!%p1400_p1)
}
 0x77f   : > { %1219 = dma.vmem_to_hbm [thread:$0]  (%p1580_p5), %s1010_s20, 128, %s1012_s19, %s992_s22  }
 0x780 PF: > { %p1236_p2 = scmp.ge.s32.totalorder %s1446_s16, 2  ;;  %s1040_s15 = sand.u32 1, %s1434_s29  }
 0x781   : > { %s1041_s26 = scalar_lea.sflag [#allocation4], %s1040_s15 }
 0x782   : > { %p1228_p3 = pnand %p1236_p2, %p1584_p6 }
 0x784   : > { %p1229_p4 = pneg %p1228_p3 }
 0x786   : > { %1425 = dma.done.wait (%p1229_p4), %s1041_s26, 128  }
 0x787   : > { %1427 = vsyncadd (%p1229_p4), %s1041_s26, 4294967168  ;;  %s1051_s27 = scalar_lea.sflag [#allocation7], %s1040_s15 }
 0x788   : > { %1429 = dma.done.wait (%p1229_p4), %s1051_s27, 512  }
 0x789   : > { %1431 = vsyncadd (%p1229_p4), %s1051_s27, 4294966784  ;;  %s1807_s16 = sld [smem:[#allocation12_spill]]  ;;  %s1810_s29 = smov %s1438_s30 }
 0x78a   : > { %s1808_s18 = sld [smem:[#allocation11_spill]] }
 0x78b   : > { %s1809_s15 = sld [smem:[#allocation13_spill]] }
 0x78f   : > { %p29_p5 = scmp.ge.s32.totalorder %s1807_s16, 4  }
 0x790   : > { %s1811_s30 = smov %s1808_s18 }
 0x791   :  { %31 = sbr.rel (!%p29_p5) target bundleno = 12 (0xc), region = 132 }
 0x796   :  { %1057 = vsyncpa [#allocation3], 1 }
 0x797   :  { %1059 = vsyncpa [#allocation3 + $0x1], 1 }
 0x798   :  { %1060 = vsyncpa [#allocation4], 1 }
 0x799   :  { %1062 = vsyncpa [#allocation4 + $0x1], 1 }
 0x79a   :  { %1063 = vsyncpa [#allocation7], 1 }
 0x79b   :  { %1065 = vsyncpa [#allocation7 + $0x1], 1 }

</bundles_post_ra>
